<compile_context>
chip_gen: v5e
topology: v5e:2x2
jax: 0.10.0
libtpu: 0.0.40
codegen_flags: <defaults>
</compile_context>

<pallas_src>
import jax
import jax.numpy as jnp
from jax import lax
from jax.experimental import pallas as pl
from jax.experimental.pallas import tpu as pltpu


_TARGET_IN_BLOCK_BYTES = 6 * 1024 * 1024  # ~4-8 MiB per-step input block target


def _round_up(a, b):
    return (a + b - 1) // b * b


def _vmem_budgets():
    """(block_budget_bytes, vmem_limit_bytes), generation-aware."""
    cap = None
    try:
        cap = pltpu.get_tpu_info().vmem_capacity_bytes
    except Exception:
        cap = None
    if cap is None:
        cap = 64 * 1024 * 1024  # conservative (v7x-sized) fallback
    if cap >= 100 * 1024 * 1024:
        # v5e / v6e: 128 MiB physical VMEM
        return 48 * 1024 * 1024, 64 * 1024 * 1024
    # v7x: 64 MiB physical VMEM
    return 20 * 1024 * 1024, 32 * 1024 * 1024


def _plan_tiles(N, C, HW, itemsize, out_itemsize, budget):
    """Pick (tn, c_tile, hw_tile). c_tile == C means single-shot reduction."""
    # Batch tile: dtype-packing aware so (tn, hw_tile) output stores fill whole
    # packed vregs; full batch extent when N is small (exempt from the /8 rule).
    pack = max(1, 4 // out_itemsize)
    tn_target = 8 * pack
    tn = N if N < tn_target else tn_target

    hw_min = HW if HW <= 128 else 128

    def block_bytes(c_blk, hw_blk):
        # double-buffered input tile + double-buffered output tile
        return 2 * tn * c_blk * hw_blk * itemsize + 2 * tn * hw_blk * out_itemsize

    if block_bytes(C, hw_min) <= budget:
        # ----- single-shot reduction over the full channel extent --------------
        c_tile = C
        if HW <= 128:
            hw_tile = HW  # full extent, exempt from the 128 rule
        else:
            raw = _TARGET_IN_BLOCK_BYTES // max(1, tn * C * itemsize)
            hw_tile = max(128, raw // 128 * 128)
            while hw_tile > 128 and block_bytes(C, hw_tile) > budget:
                hw_tile -= 128
            if hw_tile >= HW:
                hw_tile = HW  # full extent, exempt from the 128 rule
        # Guarantee >=2 grid blocks so both v7x TensorCores get work
        # (harmless extra pipeline step on single-TC v5e / v6e).
        if pl.cdiv(N, tn) * pl.cdiv(HW, hw_tile) == 1 and HW >= 256:
            hw_tile = max(128, _round_up(pl.cdiv(HW, 2), 128))
        return tn, c_tile, hw_tile

    # ----- large C: tile the reduction over a trailing 'arbitrary' grid axis ---
    hw_tile = hw_min
    scratch = tn * hw_tile * 4  # f32 accumulator
    avail = max(0, budget - 2 * tn * hw_tile * out_itemsize - scratch)
    c_tile = max(8, (avail // max(1, 2 * tn * hw_tile * itemsize)) // 8 * 8)
    c_tile = min(c_tile, _round_up(C, 8))
    return tn, c_tile, hw_tile


def _dim_avg_kernel(x_ref, o_ref):
    # x_ref: (TN, C, HW_TILE) ; o_ref: (TN, HW_TILE).  C is the full extent here.
    inv_c = 1.0 / x_ref.shape[1]  # compile-time constant, true channel count
    s = jnp.sum(x_ref[...], axis=1, dtype=jnp.float32)  # f32 accumulation
    o_ref[...] = (s * inv_c).astype(o_ref.dtype)


def _make_ctiled_kernel(C, c_tile):
    """Kernel for the C-tiled path: grid = (n, hw, c) with c last ('arbitrary')."""
    inv_c = 1.0 / C
    needs_mask = (C % c_tile) != 0

    def kernel(x_ref, o_ref, acc_ref):
        c = pl.program_id(2)

        @pl.when(c == 0)
        def _():
            acc_ref[...] = jnp.zeros_like(acc_ref)

        x = x_ref[...]
        if needs_mask:
            # Last C block is partial: zero out-of-bounds channels so they never
            # pollute the running sum (N/HW junk is handled by masked writeback).
            valid = C - c * c_tile
            ch = lax.broadcasted_iota(jnp.int32, x.shape, 1)
            x = jnp.where(ch < valid, x, jnp.zeros_like(x))
        acc_ref[...] += jnp.sum(x, axis=1, dtype=jnp.float32)

        @pl.when(c == pl.num_programs(2) - 1)
        def _():
            o_ref[...] = (acc_ref[...] * inv_c).astype(o_ref.dtype)

    return kernel


def dimension_averaging(x, *, _tiles=None):
    """Equivalent of torch.mean(x, dim=1, keepdim=True) for an NCHW tensor."""
    N, C, H, W = x.shape
    HW = H * W
    out_dtype = x.dtype
    itemsize = jnp.dtype(x.dtype).itemsize
    out_itemsize = jnp.dtype(out_dtype).itemsize

    budget, vmem_limit = _vmem_budgets()
    if _tiles is None:
        tn, c_tile, hw_tile = _plan_tiles(N, C, HW, itemsize, out_itemsize, budget)
    else:
        tn, c_tile, hw_tile = _tiles  # testing hook

    x_flat = x.reshape(N, C, HW)  # metadata-only (contiguous)
    out_shape = jax.ShapeDtypeStruct((N, HW), out_dtype)
    cost = pl.CostEstimate(
        flops=N * C * HW,
        transcendentals=0,
        bytes_accessed=N * C * HW * itemsize + N * HW * out_itemsize,
    )

    n_blocks = pl.cdiv(N, tn)
    hw_blocks = pl.cdiv(HW, hw_tile)

    if c_tile == C:
        out_flat = pl.pallas_call(
            _dim_avg_kernel,
            out_shape=out_shape,
            grid_spec=pltpu.PrefetchScalarGridSpec(
                num_scalar_prefetch=0,
                grid=(n_blocks, hw_blocks),
                in_specs=[pl.BlockSpec((tn, C, hw_tile), lambda n, h: (n, 0, h))],
                out_specs=pl.BlockSpec((tn, hw_tile), lambda n, h: (n, h)),
            ),
            compiler_params=pltpu.CompilerParams(
                dimension_semantics=("parallel", "parallel"),
                vmem_limit_bytes=vmem_limit,
            ),
            cost_estimate=cost,
        )(x_flat)
    else:
        # Large C: reduce over a trailing 'arbitrary' grid axis with an f32 VMEM
        # accumulator so every block stays within the (v7x) VMEM budget.
        c_blocks = pl.cdiv(C, c_tile)
        out_flat = pl.pallas_call(
            _make_ctiled_kernel(C, c_tile),
            out_shape=out_shape,
            grid_spec=pltpu.PrefetchScalarGridSpec(
                num_scalar_prefetch=0,
                grid=(n_blocks, hw_blocks, c_blocks),
                in_specs=[pl.BlockSpec((tn, c_tile, hw_tile),
                                       lambda n, h, c: (n, c, h))],
                out_specs=pl.BlockSpec((tn, hw_tile), lambda n, h, c: (n, h)),
                scratch_shapes=[pltpu.VMEM((tn, hw_tile), jnp.float32)],
            ),
            compiler_params=pltpu.CompilerParams(
                dimension_semantics=("parallel", "parallel", "arbitrary"),
                vmem_limit_bytes=vmem_limit,
            ),
            cost_estimate=cost,
        )(x_flat)

    return out_flat.reshape(N, 1, H, W)  # metadata-only


if __name__ == "__main__":
    k0, k1, k2, k3 = jax.random.split(jax.random.PRNGKey(0), 4)

    # 1) Primary case from the module spec.
    x = jax.random.normal(k0, (2, 4, 16, 16), dtype=jnp.float32)
    out = dimension_averaging(x)
    jax.block_until_ready(out)
    ref = jnp.mean(x, axis=1, keepdims=True)
    assert out.shape == (2, 1, 16, 16)
    assert jnp.allclose(out, ref, atol=1e-6), "mismatch vs reference (base case)"

    # 2) Ragged N / HW: exercises cdiv boundary blocks (no pad / slice copies).
    x2 = jax.random.normal(k1, (3, 5, 15, 20), dtype=jnp.float32)
    out2 = dimension_averaging(x2)
    jax.block_until_ready(out2)
    ref2 = jnp.mean(x2, axis=1, keepdims=True)
    assert jnp.allclose(out2, ref2, atol=1e-5), "mismatch vs reference (ragged)"

    # 3) C-tiled reduction path (forced small tiles to emulate the large-C / v7x
    #    fallback): grid has a trailing 'arbitrary' axis + masked partial C block.
    x3 = jax.random.normal(k2, (2, 20, 16, 16), dtype=jnp.float32)
    out3 = dimension_averaging(x3, _tiles=(2, 8, 128))
    jax.block_until_ready(out3)
    ref3 = jnp.mean(x3, axis=1, keepdims=True)
    assert jnp.allclose(out3, ref3, atol=1e-5), "mismatch vs reference (C-tiled)"

    # 4) bf16 input: tn=16 packed output rows + partial boundary batch block.
    x4 = jax.random.normal(k3, (18, 4, 8, 16), dtype=jnp.bfloat16)
    out4 = dimension_averaging(x4)
    jax.block_until_ready(out4)
    ref4 = jnp.mean(x4.astype(jnp.float32), axis=1, keepdims=True).astype(jnp.bfloat16)
    assert jnp.allclose(out4.astype(jnp.float32), ref4.astype(jnp.float32),
                        atol=1e-2), "mismatch vs reference (bf16)"

    print("KERNEL_OK")
</pallas_src>

<mosaic_0001>
module attributes {stable_mosaic.version = 11 : i64} {
  func.func @_dim_avg_kernel(%arg0: i32, %arg1: i32, %arg2: memref<2x4x128xf32, #tpu.memory_space<vmem>>, %arg3: memref<2x128xf32, #tpu.memory_space<vmem>>) attributes {dimension_semantics = [#tpu.dimension_semantics<parallel>, #tpu.dimension_semantics<parallel>], iteration_bounds = array<i64: 1, 2>, scalar_prefetch = 0 : i64, scratch_operands = 0 : i64, tpu.core_type = #tpu.core_type<tc>, window_params = [{transform_indices = @transform_0, window_bounds = array<i64: 2, 4, 128>}, {transform_indices = @transform_1, window_bounds = array<i64: 2, 128>}]} {
    %c0 = arith.constant 0 : index
    %c0_0 = arith.constant 0 : index
    %c0_1 = arith.constant 0 : index
    %0 = vector.load %arg2[%c0, %c0_0, %c0_1] : memref<2x4x128xf32, #tpu.memory_space<vmem>>, vector<2x4x128xf32>
    %cst = arith.constant dense<0.000000e+00> : vector<2x128xf32>
    %1 = vector.multi_reduction <add>, %0, %cst [1] : vector<2x4x128xf32> to vector<2x128xf32>
    %cst_2 = arith.constant 2.500000e-01 : f32
    %2 = vector.broadcast %cst_2 : f32 to vector<2x128xf32>
    %3 = arith.mulf %1, %2 : vector<2x128xf32>
    %c0_3 = arith.constant 0 : index
    %c0_4 = arith.constant 0 : index
    %4 = vector.load %arg3[%c0_3, %c0_4] : memref<2x128xf32, #tpu.memory_space<vmem>>, vector<2x128xf32>
    tpu.vector_store %arg3[%c0_3, %c0_4], %3 {strides = array<i32>} : memref<2x128xf32, #tpu.memory_space<vmem>>, vector<2x128xf32>,
    return
  }
  func.func @transform_0(%arg0: i32, %arg1: i32) -> (i32, i32, i32) {
    %c0_i32 = arith.constant 0 : i32
    %c0_i32_0 = arith.constant 0 : i32
    return %arg0, %c0_i32, %arg1 : i32, i32, i32
  }
  func.func @transform_1(%arg0: i32, %arg1: i32) -> (i32, i32) {
    %c0_i32 = arith.constant 0 : i32
    return %arg0, %arg1 : i32, i32
  }
}

</mosaic_0001>

<bundles_post_ra>
// kernel: tpu_custom_call.1
= control target key start
LH: loop header
LB: loop body
LE: loop exit
PB: predicated region body
PF: predicated region fallthrough
CT: control target
= control target key end

     0   :  { %6 = vsyncpa [#allocation3], 0  ;;  %s607_s0 = inlined_call_operand.hbm [shape: f32[2,4,256], index: 0, kind: input, shape index: {}]   ;;  %s608_s1 = inlined_call_operand.hbm [shape: f32[2,256], index: 1, kind: output, shape index: {}]  }
   0x1   :  { %8 = vsyncpa [#allocation3 + $0x1], 0 }
   0x2   :  { %9 = vsyncpa [#allocation4], 0 }
   0x3   :  { %11 = vsyncpa [#allocation4 + $0x1], 0  ;;  %s486_s6 = smov 0   ;;  %s488_s7 = smov 0  }
   0x4   :  { %s490_s8 = smov 0   ;;  %s492_s9 = smov 0  }
   0x5   :  { %s494_s10 = smov 0   ;;  %s496_s11 = smov 0  }
   0x6 LB: > { %s281_s12 = sadd.s32 4294967295, %s471_s11   ;;  %s282_s13 = sadd.s32 4294967294, %s471_s11   ;;  %s471_s11 = sphi %s496_s11, %s17_s11   ;;  %s467_s10 = sphi %s494_s10, %s617_s10   ;;  %s463_s9 = sphi %s492_s9, %s616_s9   ;;  %s459_s8 = sphi %s490_s8, %s615_s8   ;;  %s455_s7 = sphi %s488_s7, %s614_s7   ;;  %s451_s6 = sphi %s486_s6, %s613_s6  }
   0x7   : > { %s26_s14 = sadd.s32 1, %s467_s10  ;;  %s38_s15 = sadd.s32 1, %s459_s8 }
   0x8   : > { %p27_p0 = scmp.ge.s32.totalorder %s26_s14, 2  ;;  %p45_p1 = scmp.ne.s32.totalorder %s459_s8, %s455_s7 }
   0x9   : > { %p46_p2 = scmp.eq.s32.totalorder %s471_s11, 0  ;;  %p51_p3 = scmp.ne.s32.totalorder %s455_s7, %s451_s6 }
   0xa   : > { %s619_s14 = smov (%p27_p0, %s26_s14), 0  ;;  %p52_p5 = scmp.eq.s32.totalorder %s281_s12, 0 }
   0xb   : > { %p527_p4 = por %p46_p2, %p45_p1  ;;  %s34_s17 = ssub.s32 %s467_s10, %s619_s14 }
   0xc   : > { %p77_p6 = scmp.eq.s32.totalorder %s281_s12, 1  ;;  %p36_p7 = scmp.eq.s32.totalorder %s34_s17, 0 }
   0xd   : > { %p533_p8 = por %p52_p5, %p51_p3  ;;  %p83_p10 = scmp.eq.s32.totalorder %s282_s13, 1 }
   0xe   : > { %p537_p9 = por %p77_p6, %p45_p1  ;;  %p284_p12 = scmp.ge.s32.totalorder %s471_s11, 2 }
   0xf   : > { %s542_s20 = scalar_select %p36_p7, %s459_s8, %s38_s15  }
  0x10   : > { %p544_p11 = por %p83_p10, %p51_p3  ;;  %p306_p13 = scmp.lt.s32.totalorder %s471_s11, 2 }
  0x11   : > { %s103_s22 = sand.u32 1, %s459_s8   ;;  %s286_s24 = sshll.u32 %s467_s10, 2 }
  0x12   : > { %s285_s23 = sshll.u32 %s103_s22, 3  ;;  %s114_s27 = scalar_lea.hbm %s607_s0, %s286_s24 }
  0x13   : > { %s107_s28 = scalar_lea.vmem [#allocation2], %s285_s23  ;;  %s115_s30 = sshll.u32 %s114_s27, 4  ;;  %s116_s30 = int_to_ptr.hbm [resolvable:$true] %s115_s30 }
  0x14   : > { %s117_s29 = sshll.u32 %s107_s28, 4  ;;  %p299_p0 = pnand %p306_p13, %p527_p4  ;;  %s118_s29 = int_to_ptr.vmem [resolvable:$true] %s117_s29 }
  0x15   : > { %s104_s2 = scalar_lea.sflag [#allocation3], %s103_s22  ;;  %s473_s3 = smov 128  }
  0x16   : > { %s474_s4 = smov 64   ;;  %s475_s5 = smov 4  }
  0x17   : > { %301 = dma.hbm_to_vmem [thread:$0]  (!%p299_p0), %s116_s30, 128, %s118_s29, %s104_s2, %s473_s3, %s474_s4, %s475_s5  }
  0x18   : > { %p287_p1 = scmp.ge.s32.totalorder %s471_s11, 1  ;;  %p125_p2 = scmp.lt.s32.totalorder %s471_s11, 3 }
  0x1a   : > { %p126_p3 = pnand %p287_p1, %p125_p2 }
  0x1b   : > { %s560_s12 = sand.u32 (!%p126_p3), 1, %s455_s7  }
  0x1c   : > { %129 = sbr.rel (%p126_p3) target bundleno = 54 (0x36), region = 24  ;;  %s288_s13 = sshll.u32 (!%p126_p3), %s560_s12, 3 }
  0x1d   : > { %s132_s15 = scalar_lea.sflag (!%p126_p3), [#allocation3], %s560_s12  ;;  %s135_s17 = scalar_lea.vmem (!%p126_p3), [#allocation2], %s288_s13 }
  0x21   : > { %442 = dma.done.wait (%p533_p8), %s132_s15, 128  }
  0x22   : > { %444 = vsyncadd (%p533_p8), %s132_s15, 4294967168  ;;  %vm158_vm0 = vcmask 1043456   ;;  %v156_v0 = vld [vmem:[%s135_s17] sm:$0xf]  ;;  %v157_v1 = vld [vmem:[%s135_s17 + $0x4] sm:$0xf] }
  0x23   : > { %v159_v2 = vsel %vm158_vm0, %v156_v0, 0.0  ;;  %v166_v3 = vsel %vm158_vm0, %v157_v1, 0.0  ;;  %s289_s16 = sshll.u32 %s560_s12, 1  ;;  %s291_s22 = sshll.u32 %s463_s9, 1  ;;  %vm177_vm1 = vcmask 1041409  }
  0x24   : > { %v160_v4 = vrot.slane %v159_v2, 4  ;;  %v167_v5 = vrot.slane %v166_v3, 4  ;;  %s194_s24 = scalar_lea.hbm %s608_s1, %s291_s22  ;;  %s154_s25 = scalar_lea.vmem [#allocation5], %s289_s16 }
  0x25   : > { %s196_s26 = sshll.u32 %s154_s25, 4  ;;  %s198_s27 = sshll.u32 %s194_s24, 4  ;;  %s197_s26 = int_to_ptr.vmem [resolvable:$true] %s196_s26  ;;  %s199_s27 = int_to_ptr.hbm [resolvable:$true] %s198_s27 }
  0x26   : > { %v161_v6 = vadd.f32 %v160_v4, %v159_v2  ;;  %v168_v7 = vadd.f32 %v167_v5, %v166_v3  ;;  %s182_s9 = scalar_lea.sflag [#allocation4], %s560_s12  ;;  %s403_s28 = sshra.s32 %s199_s27, 4  ;;  %s404_s28 = int_to_ptr.hbm [resolvable:$true] %s403_s28 }
  0x27   : > { %s405_s29 = scalar_lea.hbm %s404_s28, 2  ;;  %s409_s3 = scalar_lea.hbm %s608_s1, 4 }
  0x28   : > { %v162_v8 = vrot.slane %v161_v6, 2  ;;  %v169_v9 = vrot.slane %v168_v7, 2  ;;  %p406_p4 = scmp.ne.s32.totalorder %s404_s28, %s405_s29  ;;  %p410_p7 = scmp.lt.s32.totalorder %s404_s28, %s608_s1 }
  0x29   : > { %p411_p8 = scmp.lt.s32.totalorder %s409_s3, %s405_s29 }
  0x2a   : > { %v163_v10 = vadd.f32 %v162_v8, %v161_v6  ;;  %v170_v11 = vadd.f32 %v169_v9, %v168_v7  ;;  %p407_p5 = pnand %p406_p4, %p537_p9 }
  0x2b   : > { %p412_p10 = por %p411_p8, %p410_p7 }
  0x2c   : > { %v164_v12 = vrot.slane %v163_v10, 1  ;;  %v171_v13 = vrot.slane %v170_v11, 1  ;;  %p408_p6 = pneg %p407_p5 }
  0x2e   : > { %v165_v14 = vadd.f32 %v164_v12, %v163_v10  ;;  %v172_v15 = vadd.f32 %v171_v13, %v170_v11  ;;  %p413_p13 = pnand %p412_p10, %p408_p6 }
  0x30   : > { %v173_v16 = vmul.f32 0.25, %v165_v14  ;;  %v174_v17 = vmul.f32 0.25, %v172_v15 }
  0x32   : > { %v178_v18 = vsel %vm177_vm1, %v174_v17, %v173_v16 }
  0x33   : > { %180 = vst [vmem:[%s154_s25] sm:$0x3] %v178_v18 }
  0x34   : > { %416 = shalt.err (!%p413_p13)
}
  0x35   : > { %296 = dma.vmem_to_hbm [thread:$0]  (%p537_p9), %s197_s26, 32, %s199_s27, %s182_s9  }
  0x36 PF: > { %s210_s12 = sand.u32 1, %s451_s6   ;;  %p303_p0 = pnand %p284_p12, %p544_p11 }
  0x37   : > { %s211_s13 = scalar_lea.sflag [#allocation4], %s210_s12 }
  0x38   : > { %p304_p1 = pneg %p303_p0 }
  0x3a   : > { %446 = dma.done.wait (%p304_p1), %s211_s13, 32  }
  0x3b   : > { %448 = vsyncadd (%p304_p1), %s211_s13, 4294967264  ;;  %s17_s11 = sadd.s32 1, %s471_s11   ;;  %s613_s6 = smov %s455_s7 }
  0x3c   : > { %p14_p2 = scmp.ge.s32.totalorder %s17_s11, 4   ;;  %s614_s7 = smov %s459_s8 }
  0x3d   : > { %s615_s8 = smov %s542_s20  ;;  %s616_s9 = smov %s467_s10 }
  0x3e   : > { %s617_s10 = smov %s619_s14  ;;  %16 = sbr.rel (!%p14_p2) target bundleno = 6 (0x6), region = 69 }
  0x43   :  { %217 = vsyncpa [#allocation3], 1 }
  0x44   :  { %219 = vsyncpa [#allocation3 + $0x1], 1 }
  0x45   :  { %220 = vsyncpa [#allocation4], 1 }
  0x46   :  { %222 = vsyncpa [#allocation4 + $0x1], 1 }

</bundles_post_ra>
